<compile_context>
chip_gen: v7x
topology: tpu7x:2x2x1
jax: 0.10.0
libtpu: 0.0.40
codegen_flags: <defaults>
</compile_context>

<pallas_src>
import functools

import jax
import jax.numpy as jnp
from jax.experimental import pallas as pl
from jax.experimental.pallas import tpu as pltpu


def _round_up(x, m):
    return (x + m - 1) // m * m


def _budgets():
    """(target_block_bytes, vmem_limit_bytes), sized per TPU generation."""
    vmem = 64 * 1024 * 1024
    try:
        info = pltpu.get_tpu_info()
        vmem = int(getattr(info, "vmem_capacity_bytes", vmem) or vmem)
    except Exception:
        pass
    if vmem <= 64 * 1024 * 1024:        # v7x-class: 64 MiB VMEM per core
        return 4 * 1024 * 1024, 40 * 1024 * 1024
    return 8 * 1024 * 1024, 96 * 1024 * 1024   # v5e / v6e: 128 MiB


def _pick_row_tile(rows, hw, itemsize, target_block_bytes, max_tile=4096):
    """Largest 8-multiple row tile whose block fits the budget, keeping the
    grid at >= 2 steps when possible (megacore on v7x)."""
    bytes_per_row = max(hw * itemsize, 1)
    rt = (target_block_bytes // bytes_per_row) // 8 * 8
    rt = max(8, min(int(rt), max_tile))
    half = _round_up(-(-rows // 2), 8)          # ceil(rows/2) rounded to 8
    rt = min(rt, max(8, half))
    if rt >= rows:
        rt = rows                               # full extent (any row count)
    return int(rt)


def _fused_kernel(x_ref, gb_ref, o_ref, *, epsilon, hw):
    # x_ref/o_ref: (row_tile, hw); gb_ref: (row_tile, 2) = [gamma, beta].
    x = x_ref[...].astype(jnp.float32)
    inv_hw = jnp.float32(1.0 / hw)
    mean = jnp.sum(x, axis=-1, keepdims=True) * inv_hw
    centered = x - mean
    var = jnp.sum(centered * centered, axis=-1, keepdims=True) * inv_hw
    inv_std = jax.lax.rsqrt(var + jnp.float32(epsilon))
    scale = gb_ref[:, 0:1] * inv_std
    shift = gb_ref[:, 1:2] - mean * scale
    # Single streamed FMA over x; `centered` dies at the variance reduction.
    o_ref[...] = (x * scale + shift).astype(o_ref.dtype)


def _stats_kernel(x_ref, sum_ref, sq_ref, *, hw, hw_tile, mask_tail):
    # Pass 1: accumulate per-row sum / sum-of-squares across the hw axis.
    j = pl.program_id(1)

    @pl.when(j == 0)
    def _():
        sum_ref[...] = jnp.zeros_like(sum_ref)
        sq_ref[...] = jnp.zeros_like(sq_ref)

    x = x_ref[...].astype(jnp.float32)
    if mask_tail:
        lane = jax.lax.broadcasted_iota(jnp.int32, (1, x.shape[-1]), 1)
        x = jnp.where(lane + j * hw_tile < hw, x, 0.0)
    sum_ref[...] += jnp.sum(x, axis=-1, keepdims=True)
    sq_ref[...] += jnp.sum(x * x, axis=-1, keepdims=True)
    # TODO(synk): if profiling shows the VALU slot binding on v7x, route these
    # lane reductions through the idle MXU via jnp.dot(x, ones((hw_tile, 1))).


def _apply_kernel(x_ref, sum_ref, sq_ref, gb_ref, o_ref, *, epsilon, hw):
    # Pass 2: streamed affine using the f32 accumulators (biased variance).
    x = x_ref[...].astype(jnp.float32)
    inv_hw = jnp.float32(1.0 / hw)
    mean = sum_ref[...] * inv_hw
    var = jnp.maximum(sq_ref[...] * inv_hw - mean * mean, 0.0)
    inv_std = jax.lax.rsqrt(var + jnp.float32(epsilon))
    scale = gb_ref[:, 0:1] * inv_std
    shift = gb_ref[:, 1:2] - mean * scale
    o_ref[...] = (x * scale + shift).astype(o_ref.dtype)


def instance_norm_2d(x, gamma=None, beta=None, *, epsilon=1e-5, rescale=True,
                     target_block_bytes=None, vmem_limit_bytes=None):
    """x: (N, C, H, W); gamma, beta: (C,). Returns (N, C, H, W)."""
    N, C, H, W = x.shape
    rows, hw = N * C, H * W
    itemsize = jnp.dtype(x.dtype).itemsize

    tgt_default, vmem_default = _budgets()
    target_block_bytes = target_block_bytes or tgt_default
    vmem_limit_bytes = vmem_limit_bytes or vmem_default

    if rescale and gamma is not None:
        g = gamma.astype(jnp.float32)
    else:
        g = jnp.ones((C,), jnp.float32)
    if rescale and beta is not None:
        b = beta.astype(jnp.float32)
    else:
        b = jnp.zeros((C,), jnp.float32)
    assert g.shape == (C,) and b.shape == (C,)
    gb = jnp.stack([jnp.broadcast_to(g[None, :], (N, C)).reshape(rows),
                    jnp.broadcast_to(b[None, :], (N, C)).reshape(rows)],
                   axis=-1)                                     # (rows, 2) f32

    x2d = x.reshape(rows, hw)                                   # no copy

    # ---- Fused one-sweep path: even the smallest row block fits the budget.
    if min(rows, 8) * hw * itemsize <= target_block_bytes:
        row_tile = _pick_row_tile(rows, hw, itemsize, target_block_bytes)
        grid = (pl.cdiv(rows, row_tile),)
        out2d = pl.pallas_call(
            functools.partial(_fused_kernel, epsilon=epsilon, hw=hw),
            out_shape=jax.ShapeDtypeStruct((rows, hw), x.dtype),
            grid_spec=pltpu.PrefetchScalarGridSpec(
                num_scalar_prefetch=0,
                grid=grid,
                in_specs=[pl.BlockSpec((row_tile, hw), lambda i: (i, 0)),
                          pl.BlockSpec((row_tile, 2), lambda i: (i, 0))],
                out_specs=pl.BlockSpec((row_tile, hw), lambda i: (i, 0)),
            ),
            compiler_params=pltpu.CompilerParams(
                dimension_semantics=("parallel",),
                vmem_limit_bytes=vmem_limit_bytes),
        )(x2d, gb)
        return out2d.reshape(N, C, H, W)

    # ---- Large-H*W two-pass path: hw chunked on an "arbitrary" axis.
    row_tile = rows if rows < 8 else 8
    hw_tile = max(128, (target_block_bytes // max(row_tile * itemsize, 1))
                  // 128 * 128)
    hw_tile = min(hw_tile, _round_up(hw, 128))
    row_grid = pl.cdiv(rows, row_tile)
    hw_grid = pl.cdiv(hw, hw_tile)
    mask_tail = (hw % hw_tile) != 0

    sums, sqs = pl.pallas_call(
        functools.partial(_stats_kernel, hw=hw, hw_tile=hw_tile,
                          mask_tail=mask_tail),
        out_shape=(jax.ShapeDtypeStruct((rows, 1), jnp.float32),
                   jax.ShapeDtypeStruct((rows, 1), jnp.float32)),
        grid_spec=pltpu.PrefetchScalarGridSpec(
            num_scalar_prefetch=0,
            grid=(row_grid, hw_grid),
            in_specs=[pl.BlockSpec((row_tile, hw_tile), lambda i, j: (i, j))],
            out_specs=[pl.BlockSpec((row_tile, 1), lambda i, j: (i, 0)),
                       pl.BlockSpec((row_tile, 1), lambda i, j: (i, 0))],
        ),
        compiler_params=pltpu.CompilerParams(
            dimension_semantics=("parallel", "arbitrary"),
            vmem_limit_bytes=vmem_limit_bytes),
    )(x2d)

    out2d = pl.pallas_call(
        functools.partial(_apply_kernel, epsilon=epsilon, hw=hw),
        out_shape=jax.ShapeDtypeStruct((rows, hw), x.dtype),
        grid_spec=pltpu.PrefetchScalarGridSpec(
            num_scalar_prefetch=0,
            grid=(row_grid, hw_grid),
            in_specs=[pl.BlockSpec((row_tile, hw_tile), lambda i, j: (i, j)),
                      pl.BlockSpec((row_tile, 1), lambda i, j: (i, 0)),
                      pl.BlockSpec((row_tile, 1), lambda i, j: (i, 0)),
                      pl.BlockSpec((row_tile, 2), lambda i, j: (i, 0))],
            out_specs=pl.BlockSpec((row_tile, hw_tile), lambda i, j: (i, j)),
        ),
        compiler_params=pltpu.CompilerParams(
            dimension_semantics=("parallel", "parallel"),
            vmem_limit_bytes=vmem_limit_bytes),
    )(x2d, sums, sqs, gb)
    return out2d.reshape(N, C, H, W)


def _reference(x, gamma, beta, epsilon=1e-5):
    mean = jnp.mean(x, axis=(2, 3), keepdims=True)
    var = jnp.mean((x - mean) ** 2, axis=(2, 3), keepdims=True)
    out = (x - mean) / jnp.sqrt(var + epsilon)
    return gamma[None, :, None, None] * out + beta[None, :, None, None]


if __name__ == "__main__":
    # Case 1: aligned H*W (multiple of 128), module-init params (gamma=1, beta=0).
    N, C, H, W = 2, 4, 16, 16
    x = jax.random.normal(jax.random.PRNGKey(0), (N, C, H, W), jnp.float32)
    gamma = jnp.ones((C,), jnp.float32)
    beta = jnp.zeros((C,), jnp.float32)
    out = jax.block_until_ready(instance_norm_2d(x, gamma, beta, epsilon=1e-5))
    ref = _reference(x, gamma, beta, epsilon=1e-5)
    assert out.shape == (N, C, H, W)
    assert jnp.allclose(out, ref, atol=1e-5, rtol=1e-5), "mismatch (fused, aligned)"

    # Case 2: non-128-multiple H*W (400) and rows < 8, non-trivial affine params.
    k_x, k_g, k_b = jax.random.split(jax.random.PRNGKey(0), 3)
    N2, C2, H2, W2 = 2, 3, 20, 20
    x2 = jax.random.normal(k_x, (N2, C2, H2, W2), jnp.float32)
    gamma2 = 1.0 + 0.1 * jax.random.normal(k_g, (C2,), jnp.float32)
    beta2 = 0.1 * jax.random.normal(k_b, (C2,), jnp.float32)
    out2 = jax.block_until_ready(instance_norm_2d(x2, gamma2, beta2, epsilon=1e-5))
    ref2 = _reference(x2, gamma2, beta2, epsilon=1e-5)
    assert out2.shape == (N2, C2, H2, W2)
    assert jnp.allclose(out2, ref2, atol=1e-4, rtol=1e-4), "mismatch (fused, ragged)"

    # Case 3: force the large-H*W two-pass path at a small shape by shrinking
    # the block budget: ragged row blocks (rows=10, tile=8) and ragged hw
    # chunks (400 = 3*128 + 16) exercising the lane-tail mask.
    k_x3, k_g3, k_b3 = jax.random.split(jax.random.PRNGKey(0), 3)
    N3, C3, H3, W3 = 2, 5, 20, 20
    x3 = jax.random.normal(k_x3, (N3, C3, H3, W3), jnp.float32)
    gamma3 = 1.0 + 0.1 * jax.random.normal(k_g3, (C3,), jnp.float32)
    beta3 = 0.1 * jax.random.normal(k_b3, (C3,), jnp.float32)
    out3 = jax.block_until_ready(
        instance_norm_2d(x3, gamma3, beta3, epsilon=1e-5,
                         target_block_bytes=8 * 128 * 4))
    ref3 = _reference(x3, gamma3, beta3, epsilon=1e-5)
    assert out3.shape == (N3, C3, H3, W3)
    assert jnp.allclose(out3, ref3, atol=1e-4, rtol=1e-4), "mismatch (two-pass)"

    print("KERNEL_OK")
</pallas_src>

<mosaic_0001>
module attributes {stable_mosaic.version = 11 : i64} {
  func.func @_fused_kernel(%arg0: i32, %arg1: memref<8x256xf32, #tpu.memory_space<vmem>>, %arg2: memref<8x2xf32, #tpu.memory_space<vmem>>, %arg3: memref<8x256xf32, #tpu.memory_space<vmem>>) attributes {dimension_semantics = [#tpu.dimension_semantics<parallel>], iteration_bounds = array<i64: 1>, scalar_prefetch = 0 : i64, scratch_operands = 0 : i64, tpu.core_type = #tpu.core_type<tc>, window_params = [{transform_indices = @transform_0, window_bounds = array<i64: 8, 256>}, {transform_indices = @transform_1, window_bounds = array<i64: 8, 2>}, {transform_indices = @transform_2, window_bounds = array<i64: 8, 256>}]} {
    %c0 = arith.constant 0 : index
    %c0_0 = arith.constant 0 : index
    %0 = vector.load %arg1[%c0, %c0_0] : memref<8x256xf32, #tpu.memory_space<vmem>>, vector<8x256xf32>
    %cst = arith.constant dense<0.000000e+00> : vector<8xf32>
    %1 = vector.multi_reduction <add>, %0, %cst [1] : vector<8x256xf32> to vector<8xf32>
    %2 = vector.shape_cast %1 : vector<8xf32> to vector<8x1xf32>
    %cst_1 = arith.constant 3.906250e-03 : f32
    %3 = vector.broadcast %cst_1 : f32 to vector<8x1xf32>
    %4 = arith.mulf %2, %3 : vector<8x1xf32>
    %5 = vector.broadcast %4 : vector<8x1xf32> to vector<8x256xf32>
    %6 = arith.subf %0, %5 : vector<8x256xf32>
    %7 = arith.mulf %6, %6 : vector<8x256xf32>
    %cst_2 = arith.constant dense<0.000000e+00> : vector<8xf32>
    %8 = vector.multi_reduction <add>, %7, %cst_2 [1] : vector<8x256xf32> to vector<8xf32>
    %9 = vector.shape_cast %8 : vector<8xf32> to vector<8x1xf32>
    %cst_3 = arith.constant 3.906250e-03 : f32
    %10 = vector.broadcast %cst_3 : f32 to vector<8x1xf32>
    %11 = arith.mulf %9, %10 : vector<8x1xf32>
    %cst_4 = arith.constant 9.99999974E-6 : f32
    %12 = vector.broadcast %cst_4 : f32 to vector<8x1xf32>
    %13 = arith.addf %11, %12 : vector<8x1xf32>
    %14 = math.rsqrt %13 : vector<8x1xf32>
    %c0_5 = arith.constant 0 : index
    %c0_6 = arith.constant 0 : index
    %15 = vector.load %arg2[%c0_5, %c0_6] : memref<8x2xf32, #tpu.memory_space<vmem>>, vector<8x1xf32>
    %16 = arith.mulf %15, %14 : vector<8x1xf32>
    %c0_7 = arith.constant 0 : index
    %c1 = arith.constant 1 : index
    %17 = vector.load %arg2[%c0_7, %c1] : memref<8x2xf32, #tpu.memory_space<vmem>>, vector<8x1xf32>
    %18 = arith.mulf %4, %16 : vector<8x1xf32>
    %19 = arith.subf %17, %18 : vector<8x1xf32>
    %20 = vector.broadcast %16 : vector<8x1xf32> to vector<8x256xf32>
    %21 = arith.mulf %0, %20 : vector<8x256xf32>
    %22 = vector.broadcast %19 : vector<8x1xf32> to vector<8x256xf32>
    %23 = arith.addf %21, %22 : vector<8x256xf32>
    %c0_8 = arith.constant 0 : index
    %c0_9 = arith.constant 0 : index
    %24 = vector.load %arg3[%c0_8, %c0_9] : memref<8x256xf32, #tpu.memory_space<vmem>>, vector<8x256xf32>
    tpu.vector_store %arg3[%c0_8, %c0_9], %23 {strides = array<i32>} : memref<8x256xf32, #tpu.memory_space<vmem>>, vector<8x256xf32>,
    return
  }
  func.func @transform_0(%arg0: i32) -> (i32, i32) {
    %c0_i32 = arith.constant 0 : i32
    %c0_i32_0 = arith.constant 0 : i32
    return %arg0, %c0_i32 : i32, i32
  }
  func.func @transform_1(%arg0: i32) -> (i32, i32) {
    %c0_i32 = arith.constant 0 : i32
    %c0_i32_0 = arith.constant 0 : i32
    return %arg0, %c0_i32 : i32, i32
  }
  func.func @transform_2(%arg0: i32) -> (i32, i32) {
    %c0_i32 = arith.constant 0 : i32
    %c0_i32_0 = arith.constant 0 : i32
    return %arg0, %c0_i32 : i32, i32
  }
}

</mosaic_0001>

<bundles_post_ra>
// kernel: tpu_custom_call.1
= control target key start
LH: loop header
LB: loop body
LE: loop exit
PB: predicated region body
PF: predicated region fallthrough
CT: control target
= control target key end

     0   :  { %7 = vsyncpa [#allocation3], 0  ;;  %s183_s0 = inlined_call_operand.hbm [shape: f32[8,256], index: 0, kind: input, shape index: {}]   ;;  %s184_s1 = inlined_call_operand.vmem [shape: f32[8,2], index: 1, kind: input, shape index: {}]   ;;  %s185_s2 = inlined_call_operand.hbm [shape: f32[8,256], index: 2, kind: output, shape index: {}]  }
   0x1   :  { %8 = vsyncpa [#allocation4], 0  ;;  %s136_s9 = smov [#allocation2]   ;;  %s88_s13 = scalar_lea.hbm %s183_s0, 256 }
   0x2   :  { %s15_s10 = sshll.u32 %s136_s9, 4  ;;  %p89_p0 = scmp.ne.s32.totalorder %s183_s0, %s88_s13  ;;  %s16_s10 = int_to_ptr.vmem [resolvable:$true] %s15_s10 }
   0x3   :  { %p92_p1 = scmp.lt.u32.totalorder %s88_s13, %s183_s0 }
   0x5   :  { %p94_p2 = pnand %p92_p1, %p89_p0 }
   0x7   :  { %97 = shalt.err (!%p94_p2)
}
   0x8   :  { %s98_s18 = scalar_lea.vmem %s16_s10, 256  ;;  %p103_p4 = scmp.lt.s32.totalorder %s16_s10, %s16_s10 }
   0x9   :  { %p99_p3 = scmp.ne.s32.totalorder %s16_s10, %s98_s18  ;;  %p104_p5 = scmp.lt.s32.totalorder %s98_s18, %s98_s18 }
   0xb   :  { %p105_p6 = por %p104_p5, %p103_p4 }
   0xd   :  { %p106_p7 = pnand %p105_p6, %p99_p3 }
   0xf   :  { %109 = shalt.err (!%p106_p7)
}
  0x10   :  { %18 = dma.hbm_to_vmem [thread:$0]  %s183_s0, 256, %s16_s10, [#allocation3]  }
  0x11   :  { %132 = dma.done.wait [#allocation3], 256  }
  0x12   :  { %133 = vsyncadd [#allocation3], 4294967040  ;;  %v24_v0 = vld [vmem:[#allocation2] sm:$0xff]  ;;  %v25_v1 = vld [vmem:[#allocation2 + $0x8] sm:$0xff]  ;;  %v137_v10 = vmov 0   ;;  %v138_v14 = vmov 1  }
  0x13   :  { %v26_v2 = vadd.f32 %v25_v1, %v24_v0  ;;  %84 = vset.pattern.permute.xlu1 %v137_v10  ;;  %85 = vset.pattern.permute.xlu0 %v138_v14  ;;  %v40_v15 = vld [vmem:[%s184_s1] sm:$0xff]  ;;  %s139_s22 = smov 1   ;;  %s140_s23 = smov [#allocation5]  }
  0x14   :  { %s70_s24 = sshll.u32 %s140_s23, 4  ;;  %s71_s24 = int_to_ptr.vmem [resolvable:$true] %s70_s24 }
  0x15   :  { %27 = vadd.xlane.f32.xlu0 %v26_v2  ;;  %s110_s1 = scalar_lea.vmem %s71_s24, 256  ;;  %p115_p9 = scmp.lt.s32.totalorder %s71_s24, %s71_s24 }
  0x16   :  { %p111_p8 = scmp.ne.s32.totalorder %s71_s24, %s110_s1  ;;  %p116_p10 = scmp.lt.s32.totalorder %s110_s1, %s110_s1 }
  0x18   :  { %p117_p11 = por %p116_p10, %p115_p9 }
  0x1a   :  { %p118_p12 = pnand %p117_p11, %p111_p8 }
  0xa2   :  { %v28_v3 = vpop.xlane.xlu0 %27 }
  0xa3   :  { %v29_v4 = vmul.f32 0.00390625, %v28_v3 }
  0xa5   :  { %v30_v5 = vsub.f32 %v24_v0, %v29_v4  ;;  %v31_v6 = vsub.f32 %v25_v1, %v29_v4 }
  0xa7   :  { %v32_v7 = vmul.f32 %v30_v5, %v30_v5  ;;  %v33_v8 = vmul.f32 %v31_v6, %v31_v6 }
  0xa9   :  { %v34_v9 = vadd.f32 %v33_v8, %v32_v7 }
  0xab   :  { %35 = vadd.xlane.f32.xlu0 %v34_v9 }
 0x138   :  { %v36_v11 = vpop.xlane.xlu0 %35 }
 0x139   :  { %v37_v12 = vmul.f32 0.00390625, %v36_v11 }
 0x13b   :  { %v38_v13 = vadd.f32 1e-05, %v37_v12 }
 0x13d   :  { %86 = vrsqrt.f32 %v38_v13 }
 0x147   :  { %v87_v16 = vpop.eup %86 }
 0x148   :  { %v41_v17 = vmul.f32 %v87_v16, %v40_v15 }
 0x14a   :  { %v42_v18 = vmul.f32 %v41_v17, %v29_v4 }
 0x14c   :  { %44 = vrot.lane.b32.xlu1 %v42_v18, %s139_s22 }
 0x150   :  { %50 = vperm.xlu1 %84, %v41_v17  }
 0x1be   :  { %v45_v19 = vpop.permute.xlu1 %44 }
 0x1bf   :  { %v47_v20 = vsub.f32 %v40_v15, %v45_v19 }
 0x1c1   :  { %57 = vperm.xlu0 %85, %v47_v20  }
 0x1cf   :  { %v51_v21 = vpop.permute.xlu1 %50 }
 0x1d0   :  { %v53_v22 = vmul.f32 %v51_v21, %v24_v0  ;;  %v54_v23 = vmul.f32 %v51_v21, %v25_v1 }
 0x240   :  { %v58_v24 = vpop.permute.xlu0 %57 }
 0x241   :  { %v60_v25 = vadd.f32 %v58_v24, %v53_v22  ;;  %v61_v26 = vadd.f32 %v58_v24, %v54_v23 }
 0x243   :  { %62 = vst [vmem:[#allocation5] sm:$0xff] %v60_v25  ;;  %63 = vst [vmem:[#allocation5 + $0x8] sm:$0xff] %v61_v26 }
 0x244   :  { %121 = shalt.err (!%p118_p12)
}
 0x245   :  { %s122_s27 = scalar_lea.hbm %s185_s2, 256 }
 0x246   :  { %p123_p13 = scmp.ne.s32.totalorder %s185_s2, %s122_s27  ;;  %p126_p0 = scmp.lt.u32.totalorder %s122_s27, %s185_s2 }
 0x248   :  { %p128_p1 = pnand %p126_p0, %p123_p13 }
 0x24a   :  { %131 = shalt.err (!%p128_p1)
}
 0x24b   :  { %73 = dma.vmem_to_hbm [thread:$0]  %s71_s24, 256, %s185_s2, [#allocation4]  }
 0x24c   :  { %134 = dma.done.wait [#allocation4], 256  }
 0x24d   :  { %135 = vsyncadd [#allocation4], 4294967040 }
 0x24e   :  { %77 = vsyncpa [#allocation3], 1 }
 0x24f   :  { %78 = vsyncpa [#allocation4], 1 }

</bundles_post_ra>
